<compile_context>
chip_gen: v7x
topology: tpu7x:2x2x1
jax: 0.10.0
libtpu: 0.0.40
codegen_flags: <defaults>
</compile_context>

<pallas_src>
import math
from functools import partial

import jax
import jax.numpy as jnp
from jax.experimental import pallas as pl
from jax.experimental.pallas import tpu as pltpu


def _make_conv2d_kernel(N):
    """Kernel: one fused lane-dense matmul (+ bias) per batch element."""

    def kernel(x_ref, w_ref, b_ref, o_ref):
        # x_ref: (N, KKC, HoWo)   im2col slab (bf16), HoWo on lanes
        # w_ref: (Cout, KKC)      flattened weights (bf16)
        # b_ref: (Cout, 1)        bias (f32; zeros when module has bias=False)
        # o_ref: (N, Cout, HoWo)  f32 output, lane-dense
        w = w_ref[...]
        b = b_ref[...]
        for n in range(N):  # static unroll; N is tiny here
            acc = jnp.dot(w, x_ref[n], preferred_element_type=jnp.float32)
            o_ref[n] = (acc + b).astype(o_ref.dtype)

    return kernel


def conv2d_pallas(x_nchw, weight_oikk, bias=None, *, stride=1, padding=0,
                  dilation=1, groups=1, compute_dtype=jnp.bfloat16):
    """F.conv2d semantics (NCHW in / NCHW out); the matmul runs in Pallas."""
    assert groups == 1, "TODO(synk): groups > 1 not implemented"

    N, Cin, H, W = x_nchw.shape
    Cout, Cin_w, K, K2 = weight_oikk.shape
    assert Cin_w == Cin and K == K2

    Hp, Wp = H + 2 * padding, W + 2 * padding
    Ho = (Hp - dilation * (K - 1) - 1) // stride + 1
    Wo = (Wp - dilation * (K - 1) - 1) // stride + 1
    KKC = K * K * Cin
    HoWo = Ho * Wo

    # ---- wrapper glue (tiny arrays): im2col slab + flattened weight --------
    x_pad = jnp.pad(x_nchw, ((0, 0), (0, 0), (padding, padding), (padding, padding)))
    patches = []
    for ki in range(K):
        for kj in range(K):
            h0 = ki * dilation
            w0 = kj * dilation
            patches.append(
                x_pad[:, :,
                      h0:h0 + (Ho - 1) * stride + 1:stride,
                      w0:w0 + (Wo - 1) * stride + 1:stride])
    # (N, K*K, Cin, Ho, Wo) -> (N, K*K*Cin, Ho*Wo); contraction index = (tap, c)
    slab = jnp.stack(patches, axis=1).reshape(N, KKC, HoWo).astype(compute_dtype)

    # weight[o, c, ki, kj] -> w2d[o, (ki*K + kj)*Cin + c]
    w2d = jnp.transpose(weight_oikk, (0, 2, 3, 1)).reshape(Cout, KKC)
    w2d = w2d.astype(compute_dtype)

    if bias is None:
        bias_col = jnp.zeros((Cout, 1), jnp.float32)
    else:
        bias_col = bias.astype(jnp.float32).reshape(Cout, 1)

    # ---- single-step Pallas call (whole problem fits VMEM many times over) --
    out_flat = pl.pallas_call(
        _make_conv2d_kernel(N),
        out_shape=jax.ShapeDtypeStruct((N, Cout, HoWo), jnp.float32),
        grid=(1,),
        in_specs=[
            pl.BlockSpec((N, KKC, HoWo), lambda i: (0, 0, 0)),
            pl.BlockSpec((Cout, KKC), lambda i: (0, 0)),
            pl.BlockSpec((Cout, 1), lambda i: (0, 0)),
        ],
        out_specs=pl.BlockSpec((N, Cout, HoWo), lambda i: (0, 0, 0)),
        compiler_params=pltpu.CompilerParams(
            dimension_semantics=("arbitrary",)),
    )(slab, w2d, bias_col)

    # Free reshape (row-major contiguous) back to NCHW.
    return out_flat.reshape(N, Cout, Ho, Wo).astype(x_nchw.dtype)


def init_conv2d_params(key, in_channels, out_channels, kernel_size, bias=False):
    """Deterministic re-implementation of Conv2d.reset_parameters()."""
    fan_in = in_channels * kernel_size * kernel_size
    # kaiming_uniform_(a=sqrt(5)) => U(-1/sqrt(fan_in), 1/sqrt(fan_in))
    bound_w = 1.0 / math.sqrt(fan_in)
    k_w, k_b = jax.random.split(key)
    weight = jax.random.uniform(
        k_w, (out_channels, in_channels, kernel_size, kernel_size),
        dtype=jnp.float32, minval=-bound_w, maxval=bound_w)
    if bias:
        bound_b = 1.0 / math.sqrt(fan_in)
        b = jax.random.uniform(k_b, (out_channels,), dtype=jnp.float32,
                               minval=-bound_b, maxval=bound_b)
    else:
        b = None
    return weight, b


if __name__ == "__main__":
    # Module config: Conv2d(pdc=F.conv2d, in_channels=8, out_channels=8,
    #                       kernel_size=3, stride=1, padding=1, bias=False)
    N, C_IN, H, W = 2, 8, 16, 16
    C_OUT, K = 8, 3
    STRIDE, PADDING, DILATION, GROUPS = 1, 1, 1, 1

    key = jax.random.PRNGKey(0)
    k_x, k_p = jax.random.split(key)
    x = jax.random.normal(k_x, (N, C_IN, H, W), dtype=jnp.float32)
    weight, bias = init_conv2d_params(k_p, C_IN, C_OUT, K, bias=False)

    conv_fn = jax.jit(partial(conv2d_pallas, stride=STRIDE, padding=PADDING,
                              dilation=DILATION, groups=GROUPS))
    out = conv_fn(x, weight, bias)
    out = jax.block_until_ready(out)

    # Reference: XLA conv with the same bf16-cast inputs and f32 accumulation,
    # so the check stays tight despite the bf16 compute optimization.
    ref = jax.lax.conv_general_dilated(
        x.astype(jnp.bfloat16), weight.astype(jnp.bfloat16),
        window_strides=(STRIDE, STRIDE),
        padding=[(PADDING, PADDING), (PADDING, PADDING)],
        rhs_dilation=(DILATION, DILATION),
        dimension_numbers=("NCHW", "OIHW", "NCHW"),
        feature_group_count=GROUPS,
        preferred_element_type=jnp.float32)
    ref = jax.block_until_ready(ref)

    assert out.shape == (N, C_OUT, H, W), out.shape
    assert jnp.allclose(out, ref, atol=2e-3, rtol=2e-3), \
        float(jnp.max(jnp.abs(out - ref)))

    print("KERNEL_OK")
</pallas_src>

<mosaic_0001>
module attributes {stable_mosaic.version = 11 : i64} {
  func.func @kernel(%arg0: i32, %arg1: memref<2x72x256xbf16, #tpu.memory_space<vmem>>, %arg2: memref<8x72xbf16, #tpu.memory_space<vmem>>, %arg3: memref<8x1xf32, #tpu.memory_space<vmem>>, %arg4: memref<2x8x256xf32, #tpu.memory_space<vmem>>) attributes {dimension_semantics = [#tpu.dimension_semantics<arbitrary>], iteration_bounds = array<i64: 1>, scalar_prefetch = 0 : i64, scratch_operands = 0 : i64, tpu.core_type = #tpu.core_type<tc>, window_params = [{pipeline_mode = #tpu.pipeline_mode<synchronous>, transform_indices = @transform_0, window_bounds = array<i64: 2, 72, 256>}, {pipeline_mode = #tpu.pipeline_mode<synchronous>, transform_indices = @transform_1, window_bounds = array<i64: 8, 72>}, {pipeline_mode = #tpu.pipeline_mode<synchronous>, transform_indices = @transform_2, window_bounds = array<i64: 8, 1>}, {pipeline_mode = #tpu.pipeline_mode<synchronous>, transform_indices = @transform_3, window_bounds = array<i64: 2, 8, 256>}]} {
    %c0 = arith.constant 0 : index
    %c0_0 = arith.constant 0 : index
    %0 = vector.load %arg2[%c0, %c0_0] : memref<8x72xbf16, #tpu.memory_space<vmem>>, vector<8x72xbf16>
    %c0_1 = arith.constant 0 : index
    %c0_2 = arith.constant 0 : index
    %1 = vector.load %arg3[%c0_1, %c0_2] : memref<8x1xf32, #tpu.memory_space<vmem>>, vector<8x1xf32>
    %c0_3 = arith.constant 0 : index
    %c0_4 = arith.constant 0 : index
    %c0_5 = arith.constant 0 : index
    %2 = vector.load %arg1[%c0_3, %c0_4, %c0_5] : memref<2x72x256xbf16, #tpu.memory_space<vmem>>, vector<1x72x256xbf16>
    %3 = vector.shape_cast %2 : vector<1x72x256xbf16> to vector<72x256xbf16>
    %cst = arith.constant dense<0.000000e+00> : vector<8x256xf32>
    %4 = tpu.matmul %0, %3, %cst {dimension_numbers = #tpu.dot_dimension_numbers<[1], [0], [0], [1], [0, 0, 1, 1], [], []>} : vector<8x72xbf16>, vector<72x256xbf16>, vector<8x256xf32> -> vector<8x256xf32>
    %5 = vector.broadcast %1 : vector<8x1xf32> to vector<8x256xf32>
    %6 = arith.addf %4, %5 : vector<8x256xf32>
    %c0_6 = arith.constant 0 : index
    %c0_7 = arith.constant 0 : index
    %c0_8 = arith.constant 0 : index
    %7 = vector.load %arg4[%c0_6, %c0_7, %c0_8] : memref<2x8x256xf32, #tpu.memory_space<vmem>>, vector<1x8x256xf32>
    %8 = vector.shape_cast %7 : vector<1x8x256xf32> to vector<8x256xf32>
    %9 = vector.shape_cast %6 : vector<8x256xf32> to vector<1x8x256xf32>
    tpu.vector_store %arg4[%c0_6, %c0_7, %c0_8], %9 {strides = array<i32>} : memref<2x8x256xf32, #tpu.memory_space<vmem>>, vector<1x8x256xf32>,
    %c1 = arith.constant 1 : index
    %c0_9 = arith.constant 0 : index
    %c0_10 = arith.constant 0 : index
    %10 = vector.load %arg1[%c1, %c0_9, %c0_10] : memref<2x72x256xbf16, #tpu.memory_space<vmem>>, vector<1x72x256xbf16>
    %11 = vector.shape_cast %10 : vector<1x72x256xbf16> to vector<72x256xbf16>
    %cst_11 = arith.constant dense<0.000000e+00> : vector<8x256xf32>
    %12 = tpu.matmul %0, %11, %cst_11 {dimension_numbers = #tpu.dot_dimension_numbers<[1], [0], [0], [1], [0, 0, 1, 1], [], []>} : vector<8x72xbf16>, vector<72x256xbf16>, vector<8x256xf32> -> vector<8x256xf32>
    %13 = vector.broadcast %1 : vector<8x1xf32> to vector<8x256xf32>
    %14 = arith.addf %12, %13 : vector<8x256xf32>
    %c1_12 = arith.constant 1 : index
    %c0_13 = arith.constant 0 : index
    %c0_14 = arith.constant 0 : index
    %15 = vector.load %arg4[%c1_12, %c0_13, %c0_14] : memref<2x8x256xf32, #tpu.memory_space<vmem>>, vector<1x8x256xf32>
    %16 = vector.shape_cast %15 : vector<1x8x256xf32> to vector<8x256xf32>
    %17 = vector.shape_cast %14 : vector<8x256xf32> to vector<1x8x256xf32>
    tpu.vector_store %arg4[%c1_12, %c0_13, %c0_14], %17 {strides = array<i32>} : memref<2x8x256xf32, #tpu.memory_space<vmem>>, vector<1x8x256xf32>,
    return
  }
  func.func @transform_0(%arg0: i32) -> (i32, i32, i32) {
    %c0_i32 = arith.constant 0 : i32
    %c0_i32_0 = arith.constant 0 : i32
    %c0_i32_1 = arith.constant 0 : i32
    %c0_i32_2 = arith.constant 0 : i32
    return %c0_i32, %c0_i32_0, %c0_i32_1 : i32, i32, i32
  }
  func.func @transform_1(%arg0: i32) -> (i32, i32) {
    %c0_i32 = arith.constant 0 : i32
    %c0_i32_0 = arith.constant 0 : i32
    %c0_i32_1 = arith.constant 0 : i32
    return %c0_i32, %c0_i32_0 : i32, i32
  }
  func.func @transform_2(%arg0: i32) -> (i32, i32) {
    %c0_i32 = arith.constant 0 : i32
    %c0_i32_0 = arith.constant 0 : i32
    %c0_i32_1 = arith.constant 0 : i32
    return %c0_i32, %c0_i32_0 : i32, i32
  }
  func.func @transform_3(%arg0: i32) -> (i32, i32, i32) {
    %c0_i32 = arith.constant 0 : i32
    %c0_i32_0 = arith.constant 0 : i32
    %c0_i32_1 = arith.constant 0 : i32
    %c0_i32_2 = arith.constant 0 : i32
    return %c0_i32, %c0_i32_0, %c0_i32_1 : i32, i32, i32
  }
}

</mosaic_0001>

<bundles_post_ra>
// kernel: conv2d_pallas.1
= control target key start
LH: loop header
LB: loop body
LE: loop exit
PB: predicated region body
PF: predicated region fallthrough
CT: control target
= control target key end

     0   :  { %v304_v1 = vmov 0   ;;  %vm80_vm0 = vcmask 1043456   ;;  %vm76_vm1 = vcmask 588800   ;;  %s397_s0 = inlined_call_operand.vmem [shape: bf16[2,72,256], index: 0, kind: input, shape index: {}]   ;;  %s398_s2 = inlined_call_operand.vmem [shape: f32[8,1], index: 2, kind: input, shape index: {}]   ;;  %s399_s1 = inlined_call_operand.vmem [shape: bf16[8,72], index: 1, kind: input, shape index: {}]   ;;  %s400_s3 = inlined_call_operand.vmem [shape: f32[2,8,256], index: 3, kind: output, shape index: {}]  }
   0x1   :  { %v276_v0 = vld [vmem:[%s397_s0 + $0x4] ss:$8 sps:$4 sm:$0xff]   ;;  %119 = vmatprep.mubr.bf16.mxu0 %v304_v1  ;;  %223 = vmatprep.mubr.bf16.mxu1 %v304_v1  ;;  %v280_v3 = vld [vmem:[%s397_s0] ss:$8 sps:$4 sm:$0xff]   ;;  %v282_v5 = vld [vmem:[%s397_s0 + $0x14] ss:$8 sps:$4 sm:$0xff]  }
   0x2   :  { %v278_v2 = vld [vmem:[%s397_s0 + $0x4c] ss:$8 sps:$4 sm:$0xff]   ;;  %275 = vset.pattern.permute.xlu0 %v304_v1  ;;  %87 = vmatprep.subr.bf16.mxu0 %v276_v0  ;;  %v281_v4 = vld [vmem:[%s397_s0 + $0x48] ss:$8 sps:$4 sm:$0xff]   ;;  %v284_v6 = vld [vmem:[%s397_s0 + $0x5c] ss:$8 sps:$4 sm:$0xff]  }
   0x3   :  { %191 = vmatprep.subr.bf16.mxu1 %v278_v2  ;;  %88 = vmatpush1.bf16.msra.mxu0 %v280_v3  ;;  %v286_v7 = vld [vmem:[%s397_s0 + $0x10] ss:$8 sps:$4 sm:$0xff]   ;;  %v288_v9 = vld [vmem:[%s397_s0 + $0x24] ss:$8 sps:$4 sm:$0xff]   ;;  %v292_v11 = vld [vmem:[%s397_s0 + $0x20] ss:$8 sps:$4 sm:$0xff]  }
   0x4   :  { %192 = vmatpush1.bf16.msra.mxu1 %v281_v4  ;;  %89 = vmatprep.subr.bf16.mxu0 %v282_v5  ;;  %v287_v8 = vld [vmem:[%s397_s0 + $0x58] ss:$8 sps:$4 sm:$0xff]   ;;  %v290_v10 = vld [vmem:[%s397_s0 + $0x6c] ss:$8 sps:$4 sm:$0xff]   ;;  %v293_v12 = vld [vmem:[%s397_s0 + $0x68] ss:$8 sps:$4 sm:$0xff]  }
   0x5   :  { %193 = vmatprep.subr.bf16.mxu1 %v284_v6  ;;  %v294_v13 = vld [vmem:[%s397_s0 + $0x34] ss:$8 sps:$4 sm:$0xff]   ;;  %v25_v15 = vld [vmem:[%s397_s0 + $0x40] sm:$0xff]  ;;  %v259_v16 = vld [vmem:[%s397_s0 + $0x88] sm:$0xff] }
   0x6   :  { %v296_v14 = vld [vmem:[%s397_s0 + $0x7c] ss:$8 sps:$4 sm:$0xff]   ;;  %v298_v18 = vld [vmem:[%s397_s0 + $0x30] ss:$8 sps:$4 sm:$0xff]   ;;  %v248_v20 = vcombine.high %v25_v15, %v25_v15  ;;  %v269_v21 = vcombine.high %v259_v16, %v259_v16  ;;  %v247_v22 = vcombine.low %v25_v15, %v25_v15  ;;  %v268_v23 = vcombine.low %v259_v16, %v259_v16  ;;  %v15_v26 = vld [vmem:[%s399_s1] sm:$0xf] }
   0x7   :  { %90 = vmatpush1.bf16.msra.mxu0 %v286_v7  ;;  %v16_v17 = vld [vmem:[%s398_s2] sm:$0xff] }
   0x8   :  { %194 = vmatpush1.bf16.msra.mxu1 %v287_v8  ;;  %91 = vmatprep.subr.bf16.mxu0 %v288_v9  ;;  %v299_v19 = vld [vmem:[%s397_s0 + $0x78] ss:$8 sps:$4 sm:$0xff]   ;;  %v82_v24 = vsel %vm80_vm0, %v247_v22, 0  ;;  %v186_v25 = vsel %vm80_vm0, %v268_v23, 0 }
   0x9   :  { %195 = vmatprep.subr.bf16.mxu1 %v290_v10  ;;  %28 = vperm.xlu0 %275, %v16_v17  }
   0xb   :  { %92 = vmatpush1.bf16.msra.mxu0 %v292_v11 }
   0xc   :  { %196 = vmatpush1.bf16.msra.mxu1 %v293_v12  ;;  %93 = vmatprep.subr.bf16.mxu0 %v294_v13 }
   0xd   :  { %197 = vmatprep.subr.bf16.mxu1 %v296_v14 }
   0xf   :  { %94 = vmatpush1.bf16.msra.mxu0 %v298_v18 }
  0x10   :  { %198 = vmatpush1.bf16.msra.mxu1 %v299_v19  ;;  %249 = vmatprep.subr.msk.bf16.mxu0 %vm80_vm0, %v248_v20 }
  0x11   :  { %270 = vmatprep.subr.msk.bf16.mxu1 %vm80_vm0, %v269_v21 }
  0x13   :  { %96 = vmatpush1.bf16.msra.mxu0 %v82_v24 }
  0x14   :  { %200 = vmatpush1.bf16.msra.mxu1 %v186_v25 }
  0x16   :  { %250 = vmatmul.mubr.msk.bf16.vlgmr.msra.gmra.mrb[0].mxu0 %vm76_vm1, %v15_v26 }
  0x17   :  { %271 = vmatmul.mubr.msk.bf16.vlgmr.msra.gmra.mrb[0].mxu1 %vm76_vm1, %v15_v26 }
  0x88   :  { %v29_v27 = vpop.permute.xlu0 %28 }
  0xe9   :  { %v121_v28 = vpop.f32.mrb[0].mxu0 }
  0xea   :  { %v225_v29 = vpop.f32.mrb[0].mxu1  ;;  %v122_v30 = vadd.f32 %v121_v28, %v29_v27  ;;  %v123_v32 = vpop.f32.mrb[1].mxu0 }
  0xeb   :  { %v226_v31 = vadd.f32 %v225_v29, %v29_v27  ;;  %v227_v33 = vpop.f32.mrb[1].mxu1  ;;  %v124_v34 = vadd.f32 %v123_v32, %v29_v27  ;;  %v125_v36 = vpop.f32.mrb[2].mxu0 }
  0xec   :  { %v228_v35 = vadd.f32 %v227_v33, %v29_v27  ;;  %v229_v37 = vpop.f32.mrb[2].mxu1  ;;  %128 = vst [vmem:[%s400_s3] sm:$0xff] %v122_v30  ;;  %v126_v38 = vpop.f32.mrb[3].mxu0 }
  0xed   :  { %272 = vst [vmem:[%s400_s3 + $0x10] sm:$0xff] %v226_v31  ;;  %v230_v39 = vpop.f32.mrb[3].mxu1  ;;  %129 = vst [vmem:[%s400_s3 + $0x8] sm:$0xff] %v124_v34 }
  0xee   :  { %273 = vst [vmem:[%s400_s3 + $0x18] sm:$0xff] %v228_v35 }

</bundles_post_ra>
